<compile_context>
chip_gen: v7x
topology: tpu7x:2x2x1
jax: 0.10.0
libtpu: 0.0.40
codegen_flags: <defaults>
</compile_context>

<pallas_src>
import functools

import jax
import jax.numpy as jnp
import numpy as np
from jax import lax
from jax.experimental import pallas as pl
from jax.experimental.pallas import tpu as pltpu

EPS = 1e-5
GROUPS = 8


# ----------------------------- device gating --------------------------------

def _device_kind():
    try:
        return jax.devices()[0].device_kind.lower()
    except Exception:
        return ""


def _mxu_dtype():
    # bf16 operands run the v6e/v7x MXU at full rate and halve weight traffic;
    # other chips keep f32 operands for tighter fidelity to the f32 reference.
    dk = _device_kind()
    if any(tag in dk for tag in ("v6", "v7", "7x")):
        return jnp.bfloat16
    return jnp.float32


def _samples_per_block(bsz):
    # v7x has 2 TensorCores per chip: give each core its own sample via a
    # parallel batch grid.  Single-TC chips (v5e/v6e) keep one fused block so
    # this latency-bound kernel pays no per-grid-step overhead.
    dk = _device_kind()
    if bsz > 1 and any(tag in dk for tag in ("v7", "7x")):
        return 1
    return bsz


# ------------------------------ small helpers -------------------------------

def _silu(x):
    # x * sigmoid(x) == 0.5 * x * (1 + tanh(x/2)): one EUP transcendental
    # instead of exp + reciprocal on the twice-traversed critical path.
    return 0.5 * x * (1.0 + jnp.tanh(0.5 * x))


_ROLL_SIGN = None


def _get_roll_sign():
    """Probe pltpu.roll's rotation direction once (cached).

    Returns r such that pltpu.roll(x, (r*s) % n, axis)[..., i] == x[..., i+s]
    (circularly).  A tiny one-off device probe is used instead of hardcoding
    the convention so a change in pltpu.roll's direction cannot silently
    corrupt the conv taps; the end-to-end reference check in __main__
    double-validates the result.
    """
    global _ROLL_SIGN
    if _ROLL_SIGN is None:
        def probe(x_ref, o_ref):
            o_ref[...] = pltpu.roll(x_ref[...], 1, axis=1)

        x = jnp.arange(128, dtype=jnp.float32).reshape(1, 128)
        y = pl.pallas_call(
            probe, out_shape=jax.ShapeDtypeStruct((1, 128), jnp.float32))(x)
        _ROLL_SIGN = -1 if int(jax.device_get(y[0, 0])) == 127 else 1
    return _ROLL_SIGN


# --------------------------------- kernel -----------------------------------

def _residual_block_kernel(
    x_ref, w1_ref,
    gn1_s_ref, gn1_b_ref, gavg1_ref,
    gn2_s_ref, gn2_b_ref, gavg2_ref,
    w2_ref, b2_ref,
    out_ref,
    *, blk_b, ind_rows, hdim, wdim, roll_sign,
):
    cin, n = x_ref.shape
    hw = hdim * wdim
    mxu_dtype = w1_ref.dtype

    x = x_ref[...]                                              # (Cin, n) f32

    # ---- lane coordinate maps (shared by masks / indicator rows) -----------
    lane = lax.broadcasted_iota(jnp.int32, (1, n), 1)
    row = (lane % hw) // wdim
    col = lane % wdim

    # Per-sample indicator rows: row b is 1.0 on lanes of global sample b.
    # Appended to the conv1 taps so the matmul also applies the folded
    # conv1/time/feature bias columns of w1 (rows >= batch hit zero-padded
    # weight columns and contribute nothing).
    sample_of_lane = pl.program_id(0) * blk_b + lane // hw      # (1, n)
    row_ids = lax.broadcasted_iota(jnp.int32, (ind_rows, 1), 0)
    indicator = jnp.where(row_ids == sample_of_lane, 1.0, 0.0).astype(mxu_dtype)

    # Tap validity masks: zero out taps outside the HxW image; this also kills
    # cross-row / cross-sample contamination from the circular roll.
    masks = {}
    for dy in (-1, 0, 1):
        rok = ((row + dy) >= 0) & ((row + dy) < hdim)
        for dx in (-1, 0, 1):
            if dy == 0 and dx == 0:
                continue
            cok = ((col + dx) >= 0) & ((col + dx) < wdim)
            masks[(dy, dx)] = rok & cok

    def build_taps(hm):
        # hm: (C, n), already cast ONCE to the MXU dtype, so rolls / masks run
        # on the narrow data.  Tap order matches the (ky, kx)-row-major weight
        # reshape done in the wrapper.
        taps = []
        for dy in (-1, 0, 1):
            for dx in (-1, 0, 1):
                s = dy * wdim + dx
                if s == 0:
                    taps.append(hm)
                else:
                    t = pltpu.roll(hm, (roll_sign * s) % n, axis=1)
                    taps.append(jnp.where(masks[(dy, dx)], t, 0.0))
        return taps

    def expand_cols(v):
        # (C, blk_b) per-sample values -> (C, n) via cheap lane broadcasts.
        c = v.shape[0]
        if blk_b == 1:
            return jnp.broadcast_to(v, (c, hw))
        return jnp.concatenate(
            [jnp.broadcast_to(v[:, b:b + 1], (c, hw)) for b in range(blk_b)],
            axis=1)

    def group_norm_silu(h, gavg_ref_, scale, bias):
        # h: (C, n) f32.  Per-sample channel stats are lane reductions; the
        # group combine is ONE (C,C)@(C,blk_b) block-averaging matmul per
        # statistic (batched over the block's samples).  gavg entries are
        # 1/group_size (exact in low precision for power-of-two groups) and
        # the statistics themselves stay f32 outside the tiny dot.
        gavg = gavg_ref_[...]
        inv_hw = 1.0 / hw
        csum = [jnp.sum(h[:, b * hw:(b + 1) * hw], axis=1, keepdims=True)
                for b in range(blk_b)]
        cmean = (csum[0] if blk_b == 1 else jnp.concatenate(csum, axis=1)) * inv_hw
        gmean = jnp.dot(gavg, cmean, preferred_element_type=jnp.float32)
        d = h - expand_cols(gmean)                              # centered (two-pass var)
        d2 = d * d
        vsum = [jnp.sum(d2[:, b * hw:(b + 1) * hw], axis=1, keepdims=True)
                for b in range(blk_b)]
        cvar = (vsum[0] if blk_b == 1 else jnp.concatenate(vsum, axis=1)) * inv_hw
        gvar = jnp.dot(gavg, cvar, preferred_element_type=jnp.float32)
        a = lax.rsqrt(gvar + EPS) * scale                       # (C, blk_b)
        return _silu(d * expand_cols(a) + bias)

    # norm1 -> SiLU -> conv1 (conv1/time/feature biases folded into w1)
    h = group_norm_silu(x, gavg1_ref, gn1_s_ref[...], gn1_b_ref[...])
    taps1 = build_taps(h.astype(mxu_dtype)) + [indicator]
    h = jnp.dot(w1_ref[...], jnp.concatenate(taps1, axis=0),
                preferred_element_type=jnp.float32)             # (Cout, n)

    # norm2 -> SiLU -> conv2 fused with the 1x1 skip (+ b2 + bskip)
    h = group_norm_silu(h, gavg2_ref, gn2_s_ref[...], gn2_b_ref[...])
    taps2 = build_taps(h.astype(mxu_dtype)) + [x.astype(mxu_dtype)]
    out = jnp.dot(w2_ref[...], jnp.concatenate(taps2, axis=0),
                  preferred_element_type=jnp.float32) + b2_ref[...]

    out_ref[...] = out.astype(out_ref.dtype)                    # lane-dense store


# --------------------------------- wrapper ----------------------------------

def residual_block_forward(x_nchw, t_emb, f_emb, params):
    """x_nchw: (B, Cin, H, W); t_emb: (B, Td); f_emb: (B, Fd) -> (B, Cout, H, W)."""
    bsz, cin, hdim, wdim = x_nchw.shape
    cout = params["w1"].shape[-1]
    hw = hdim * wdim
    n = bsz * hw

    mxu_dtype = _mxu_dtype()
    blk_b = _samples_per_block(bsz)
    blk_n = blk_b * hw
    grid = (bsz // blk_b,)
    ind_rows = ((bsz + 7) // 8) * 8       # pad indicator rows / bias columns to 8

    # channels-first, flattened batch+spatial: (Cin, B*H*W), lane-dense last dim
    xcf = jnp.transpose(x_nchw, (1, 0, 2, 3)).reshape(cin, n).astype(jnp.float32)

    # conv weights -> (Cout, 9*Cin), matching the im2col tap stacking order
    w1 = jnp.transpose(params["w1"].reshape(9, cin, cout), (2, 0, 1)).reshape(cout, 9 * cin)
    w2 = jnp.transpose(params["w2"].reshape(9, cout, cout), (2, 0, 1)).reshape(cout, 9 * cout)

    # conv1 bias + time/feature projections folded into extra w1 columns that
    # are matched by per-sample indicator rows inside the kernel.
    tb = t_emb.astype(jnp.float32) @ params["wt"] + params["bt"]      # (B, Cout)
    fb = f_emb.astype(jnp.float32) @ params["wf"] + params["bf"]      # (B, Cout)
    bias1 = (tb + fb + params["b1"]).T                                # (Cout, B)
    bias1 = jnp.pad(bias1, ((0, 0), (0, ind_rows - bsz)))
    w1aug = jnp.concatenate([w1, bias1], axis=1).astype(mxu_dtype)    # (Cout, 9Cin+ind)

    # 1x1 skip folded into conv2; bskip folded into b2.
    w2cat = jnp.concatenate([w2, params["wskip"].T], axis=1).astype(mxu_dtype)
    b2cat = (params["b2"] + params["bskip"]).reshape(cout, 1).astype(jnp.float32)

    def gavg(c):
        cg = c // GROUPS
        blk = (jnp.arange(c)[:, None] // cg) == (jnp.arange(c)[None, :] // cg)
        return blk.astype(jnp.float32) / cg                            # (C, C)

    kernel = functools.partial(
        _residual_block_kernel,
        blk_b=blk_b, ind_rows=ind_rows, hdim=hdim, wdim=wdim,
        roll_sign=_get_roll_sign())

    def full(shape):
        return pl.BlockSpec(shape, lambda i: (0, 0))

    # NOTE: at larger U-Net stages (bigger C / H*W), add lane tiling on the
    # spatial axis and set vmem_limit_bytes: the (9C, n) im2col is a 9x
    # activation expansion and v7x has only 64 MiB of physical VMEM.
    out_cf = pl.pallas_call(
        kernel,
        out_shape=jax.ShapeDtypeStruct((cout, n), jnp.float32),
        grid=grid,
        in_specs=[
            pl.BlockSpec((cin, blk_n), lambda i: (0, i)),         # x (per-sample blocks)
            full((cout, 9 * cin + ind_rows)),                     # w1 + folded biases
            full((cin, 1)), full((cin, 1)), full((cin, cin)),     # GN1 params
            full((cout, 1)), full((cout, 1)), full((cout, cout)),  # GN2 params
            full((cout, 9 * cout + cin)),                         # w2 + 1x1 skip
            full((cout, 1)),                                      # b2 + bskip
        ],
        out_specs=pl.BlockSpec((cout, blk_n), lambda i: (0, i)),
        compiler_params=pltpu.CompilerParams(dimension_semantics=("parallel",)),
    )(
        xcf, w1aug,
        params["gn1_scale"].reshape(cin, 1), params["gn1_bias"].reshape(cin, 1), gavg(cin),
        params["gn2_scale"].reshape(cout, 1), params["gn2_bias"].reshape(cout, 1), gavg(cout),
        w2cat, b2cat,
    )

    return jnp.transpose(out_cf.reshape(cout, bsz, hdim, wdim), (1, 0, 2, 3))


# ------------------------- deterministic parameters --------------------------

def init_params(key, in_channels, out_channels, time_emb_dim, feature_emb_dim):
    ks = jax.random.split(key, 14)
    rnd = lambda k, s: 0.1 * jax.random.normal(k, s, jnp.float32)
    p = {
        "gn1_scale": 1.0 + rnd(ks[0], (1, in_channels)),
        "gn1_bias": rnd(ks[1], (1, in_channels)),
        "w1": rnd(ks[2], (3, 3, in_channels, out_channels)),      # HWIO
        "b1": rnd(ks[3], (1, out_channels)),
        "wt": rnd(ks[4], (time_emb_dim, out_channels)),
        "bt": rnd(ks[5], (1, out_channels)),
        "wf": rnd(ks[6], (feature_emb_dim, out_channels)),
        "bf": rnd(ks[7], (1, out_channels)),
        "gn2_scale": 1.0 + rnd(ks[8], (1, out_channels)),
        "gn2_bias": rnd(ks[9], (1, out_channels)),
        "w2": rnd(ks[10], (3, 3, out_channels, out_channels)),
        "b2": rnd(ks[11], (1, out_channels)),
    }
    if in_channels != out_channels:
        p["wskip"] = rnd(ks[12], (in_channels, out_channels))     # 1x1 conv
        p["bskip"] = rnd(ks[13], (1, out_channels))
    else:
        p["wskip"] = jnp.eye(in_channels, dtype=jnp.float32)      # nn.Identity
        p["bskip"] = jnp.zeros((1, out_channels), jnp.float32)
    return p


# ----------------------------- pure-JAX reference ----------------------------

def _ref_group_norm(x, scale, bias):
    b, h, w, c = x.shape
    xg = x.reshape(b, h, w, GROUPS, c // GROUPS)
    mean = xg.mean(axis=(1, 2, 4), keepdims=True)
    var = jnp.mean((xg - mean) ** 2, axis=(1, 2, 4), keepdims=True)
    xn = ((xg - mean) / jnp.sqrt(var + EPS)).reshape(b, h, w, c)
    return xn * scale.reshape(1, 1, 1, c) + bias.reshape(1, 1, 1, c)


def residual_block_ref(x_nchw, t_emb, f_emb, params):
    x = jnp.transpose(x_nchw, (0, 2, 3, 1)).astype(jnp.float32)
    conv = lambda a, w: lax.conv_general_dilated(
        a, w, (1, 1), "SAME", dimension_numbers=("NHWC", "HWIO", "NHWC"))
    h = _ref_group_norm(x, params["gn1_scale"], params["gn1_bias"])
    h = h * jax.nn.sigmoid(h)
    h = conv(h, params["w1"]) + params["b1"].reshape(1, 1, 1, -1)
    tb = t_emb @ params["wt"] + params["bt"]
    fb = f_emb @ params["wf"] + params["bf"]
    h = h + tb[:, None, None, :] + fb[:, None, None, :]
    h = _ref_group_norm(h, params["gn2_scale"], params["gn2_bias"])
    h = h * jax.nn.sigmoid(h)
    h = conv(h, params["w2"]) + params["b2"].reshape(1, 1, 1, -1)
    skip = jnp.einsum("bhwc,cd->bhwd", x, params["wskip"]) + params["bskip"].reshape(1, 1, 1, -1)
    return jnp.transpose(skip + h, (0, 3, 1, 2))


# ------------------------------------ main -----------------------------------

if __name__ == "__main__":
    key = jax.random.PRNGKey(0)
    B, Cin, Cout, H, W = 2, 8, 16, 16, 16
    Tdim, Fdim = 32, 24

    k1, k2, k3, k4 = jax.random.split(key, 4)
    x = jax.random.normal(k1, (B, Cin, H, W), jnp.float32)
    t_emb = jax.random.normal(k2, (B, Tdim), jnp.float32)
    f_emb = jax.random.normal(k3, (B, Fdim), jnp.float32)
    params = init_params(k4, Cin, Cout, Tdim, Fdim)

    out = residual_block_forward(x, t_emb, f_emb, params)
    out = jax.block_until_ready(out)

    ref = residual_block_ref(x, t_emb, f_emb, params)
    # bf16 MXU operands (v6e/v7x) need a looser bound than the f32 path.
    tol = 2e-2 if _mxu_dtype() == jnp.bfloat16 else 4e-3
    np.testing.assert_allclose(np.asarray(out), np.asarray(ref), atol=tol, rtol=tol)

    print("KERNEL_OK")
</pallas_src>

<mosaic_0001>
module attributes {stable_mosaic.version = 11 : i64} {
  func.func @probe(%arg0: memref<1x128xf32, #tpu.memory_space<vmem>>, %arg1: memref<1x128xf32, #tpu.memory_space<vmem>>) attributes {dimension_semantics = [], scalar_prefetch = 0 : i64, scratch_operands = 0 : i64, tpu.core_type = #tpu.core_type<tc>} {
    %c0 = arith.constant 0 : index
    %c0_0 = arith.constant 0 : index
    %0 = vector.load %arg0[%c0, %c0_0] : memref<1x128xf32, #tpu.memory_space<vmem>>, vector<1x128xf32>
    %c1_i32 = arith.constant 1 : i32
    %1 = tpu.dynamic_rotate %0 by %c1_i32 dim 1 : vector<1x128xf32>, i32 -> vector<1x128xf32>
    %c0_1 = arith.constant 0 : index
    %c0_2 = arith.constant 0 : index
    %2 = vector.load %arg1[%c0_1, %c0_2] : memref<1x128xf32, #tpu.memory_space<vmem>>, vector<1x128xf32>
    tpu.vector_store %arg1[%c0_1, %c0_2], %1 {strides = array<i32>} : memref<1x128xf32, #tpu.memory_space<vmem>>, vector<1x128xf32>,
    return
  }
}

</mosaic_0001>

<bundles_post_ra>
// kernel: tpu_custom_call.1
= control target key start
LH: loop header
LB: loop body
LE: loop exit
PB: predicated region body
PF: predicated region fallthrough
CT: control target
= control target key end

     0   :  { %6 = vsyncpa [#allocation3], 0  ;;  %s128_s0 = inlined_call_operand.hbm [shape: f32[1,128], index: 0, kind: input, shape index: {}]   ;;  %s129_s1 = inlined_call_operand.hbm [shape: f32[1,128], index: 1, kind: output, shape index: {}]  }
   0x1   :  { %7 = vsyncpa [#allocation4], 0  ;;  %s91_s6 = smov [#allocation2]   ;;  %s43_s10 = scalar_lea.hbm %s128_s0, 16 }
   0x2   :  { %s14_s7 = sshll.u32 %s91_s6, 4  ;;  %p44_p0 = scmp.ne.s32.totalorder %s128_s0, %s43_s10  ;;  %s15_s7 = int_to_ptr.vmem [resolvable:$true] %s14_s7 }
   0x3   :  { %p47_p1 = scmp.lt.u32.totalorder %s43_s10, %s128_s0 }
   0x5   :  { %p49_p2 = pnand %p47_p1, %p44_p0 }
   0x7   :  { %52 = shalt.err (!%p49_p2)
}
   0x8   :  { %s53_s15 = scalar_lea.vmem %s15_s7, 16  ;;  %s57_s16 = scalar_lea.vmem %s15_s7, 32 }
   0x9   :  { %p54_p3 = scmp.ne.s32.totalorder %s15_s7, %s53_s15  ;;  %p58_p4 = scmp.lt.s32.totalorder %s15_s7, %s15_s7 }
   0xa   :  { %p59_p5 = scmp.lt.s32.totalorder %s57_s16, %s53_s15 }
   0xc   :  { %p60_p6 = por %p59_p5, %p58_p4 }
   0xe   :  { %p61_p7 = pnand %p60_p6, %p54_p3 }
  0x10   :  { %64 = shalt.err (!%p61_p7)
}
  0x11   :  { %17 = dma.hbm_to_vmem [thread:$0]  %s128_s0, 16, %s15_s7, [#allocation3]  }
  0x12   :  { %87 = dma.done.wait [#allocation3], 16  }
  0x13   :  { %88 = vsyncadd [#allocation3], 4294967280  ;;  %v21_v0 = vld [vmem:[#allocation2] sm:$0x1]  ;;  %s92_s19 = smov 1   ;;  %s93_s20 = smov [#allocation5]  }
  0x14   :  { %22 = vrot.lane.b32.xlu0 %v21_v0, %s92_s19  ;;  %s31_s21 = sshll.u32 %s93_s20, 4  ;;  %s32_s21 = int_to_ptr.vmem [resolvable:$true] %s31_s21 }
  0x15   :  { %s65_s22 = scalar_lea.vmem %s32_s21, 16  ;;  %s69_s23 = scalar_lea.vmem %s32_s21, 32 }
  0x16   :  { %p66_p8 = scmp.ne.s32.totalorder %s32_s21, %s65_s22  ;;  %p70_p9 = scmp.lt.s32.totalorder %s32_s21, %s32_s21 }
  0x17   :  { %p71_p10 = scmp.lt.s32.totalorder %s69_s23, %s65_s22 }
  0x19   :  { %p72_p11 = por %p71_p10, %p70_p9 }
  0x1b   :  { %p73_p12 = pnand %p72_p11, %p66_p8 }
  0x86   :  { %v23_v1 = vpop.permute.xlu0 %22 }
  0x87   :  { %24 = vst [vmem:[#allocation5] sm:$0x1] %v23_v1 }
  0x88   :  { %76 = shalt.err (!%p73_p12)
}
  0x89   :  { %s77_s25 = scalar_lea.hbm %s129_s1, 16 }
  0x8a   :  { %p78_p13 = scmp.ne.s32.totalorder %s129_s1, %s77_s25  ;;  %p81_p0 = scmp.lt.u32.totalorder %s77_s25, %s129_s1 }
  0x8c   :  { %p83_p1 = pnand %p81_p0, %p78_p13 }
  0x8e   :  { %86 = shalt.err (!%p83_p1)
}
  0x8f   :  { %34 = dma.vmem_to_hbm [thread:$0]  %s32_s21, 16, %s129_s1, [#allocation4]  }
  0x90   :  { %89 = dma.done.wait [#allocation4], 16  }
  0x91   :  { %90 = vsyncadd [#allocation4], 4294967280 }
  0x92   :  { %38 = vsyncpa [#allocation3], 1 }
  0x93   :  { %39 = vsyncpa [#allocation4], 1 }

</bundles_post_ra>
